<compile_context>
chip_gen: v7x
topology: tpu7x:2x2x1
jax: 0.10.0
libtpu: 0.0.40
codegen_flags: <defaults>
</compile_context>

<pallas_src>
import functools

import jax
import jax.numpy as jnp
from jax.experimental import pallas as pl
from jax.experimental.pallas import tpu as pltpu

# Synthetic dims standing in for len(training[0]) and len(output[0]).
IN_DIM = 37       # len(training[0])  (intentionally not a multiple of 128)
HIDDEN = 128
OUT_DIM = 29      # len(output[0])    (intentionally not a multiple of 128)
BATCH = 16        # small demo batch


def _round_up(x, m):
    return (x + m - 1) // m * m


def _num_tensorcores():
    """1 TensorCore on v5e/v6e; 2 (megacore / dual-TC) on v4/v5p/v7x."""
    try:
        kind = jax.devices()[0].device_kind.lower()
        if ("v7" in kind) or ("v4" in kind) or ("v5p" in kind):
            return 2
    except Exception:
        pass
    return 1


# ----------------------------------------------------------------------------- kernel

def chat_model_kernel(x_ref,
                      w1_ref, b1_ref,
                      w2_ref, b2_ref,
                      w3_ref, b3_ref,
                      w4_ref, b4_ref,
                      w5_ref, b5_ref,
                      o_ref):
    cdt = w1_ref.dtype                      # MXU input dtype (bf16), f32 accumulate
    x = x_ref[...].astype(cdt)              # (TM, IN_PAD)

    # fc1..fc4 with ReLU — all matmuls on the MXU, f32 accumulation.
    h = jnp.dot(x, w1_ref[...], preferred_element_type=jnp.float32) + b1_ref[...]
    h = jnp.maximum(h, 0.0)
    h = jnp.dot(h.astype(cdt), w2_ref[...], preferred_element_type=jnp.float32) + b2_ref[...]
    h = jnp.maximum(h, 0.0)
    h = jnp.dot(h.astype(cdt), w3_ref[...], preferred_element_type=jnp.float32) + b3_ref[...]
    h = jnp.maximum(h, 0.0)
    h = jnp.dot(h.astype(cdt), w4_ref[...], preferred_element_type=jnp.float32) + b4_ref[...]
    h = jnp.maximum(h, 0.0)

    # fc5 + softmax over dim=1 (feature axis). Padded output columns carry a -1e30
    # (f32) bias so they contribute exp(...) == 0 to the denominator.
    logits = jnp.dot(h.astype(cdt), w5_ref[...],
                     preferred_element_type=jnp.float32) + b5_ref[...]
    m = jnp.max(logits, axis=1, keepdims=True)
    e = jnp.exp(logits - m)
    s = jnp.sum(e, axis=1, keepdims=True)
    inv = pl.reciprocal(s, approx=True)     # EUP slot
    inv = inv * (2.0 - s * inv)             # one Newton step -> ~f32 accuracy
    o_ref[...] = e * inv


# ----------------------------------------------------------------------------- wrapper

@functools.partial(jax.jit,
                   static_argnames=("out_dim", "num_tiles", "max_block_rows"))
def chat_model_forward(x, params, *, out_dim, num_tiles=1, max_block_rows=4096):
    """x: (B, IN_DIM) f32; params: pre-padded (see prep_params).

    Returns softmax probabilities (B, out_dim) f32 in a single jitted dispatch.
    """
    (w1p, b1, w2, b2, w3, b3, w4, b4, w5p, b5p) = params
    B, in_dim = x.shape
    in_pad = w1p.shape[0]
    out_pad = w5p.shape[1]

    # One batch tile per TensorCore (balanced, no over-padding); split further
    # only if a single tile would exceed the per-tile row cap (VMEM headroom).
    n_tiles = max(1, min(num_tiles, pl.cdiv(B, 8)))
    n_tiles = max(n_tiles, pl.cdiv(B, max_block_rows))
    TM = _round_up(pl.cdiv(B, n_tiles), 8)
    Bp = TM * n_tiles

    # Only the activations are padded per call (fused inside this jit).
    xp = jnp.pad(x, ((0, Bp - B), (0, in_pad - in_dim)))

    # Weights/biases: full-array blocks with constant index_maps -> fetched once,
    # VMEM-resident across all batch tiles. Only x/out tiles stream per step.
    def resident(arr):
        return pl.BlockSpec(arr.shape, lambda i: (0, 0))

    out = pl.pallas_call(
        chat_model_kernel,
        out_shape=jax.ShapeDtypeStruct((Bp, out_pad), jnp.float32),
        grid=(n_tiles,),
        in_specs=[
            pl.BlockSpec((TM, in_pad), lambda i: (i, 0)),
            resident(w1p), resident(b1),
            resident(w2), resident(b2),
            resident(w3), resident(b3),
            resident(w4), resident(b4),
            resident(w5p), resident(b5p),
        ],
        out_specs=pl.BlockSpec((TM, out_pad), lambda i: (i, 0)),
        compiler_params=pltpu.CompilerParams(
            dimension_semantics=("parallel",),   # dual-TC chips split batch tiles
        ),
    )(xp, w1p, b1, w2, b2, w3, b3, w4, b4, w5p, b5p)

    return out[:B, :out_dim]


# ----------------------------------------------------------------------------- params

def init_params(key, in_dim=IN_DIM, hidden=HIDDEN, out_dim=OUT_DIM,
                weight_dtype=jnp.bfloat16):
    """Mirrors nn.Linear default init U(-1/sqrt(fan_in), 1/sqrt(fan_in)).

    Weights stored as [in, out] (kernel computes x @ W == x @ W_pt.T) in bf16;
    biases stay f32 (added after the f32-accumulated matmul).
    """
    dims = [(in_dim, hidden), (hidden, hidden), (hidden, hidden),
            (hidden, hidden), (hidden, out_dim)]
    params = []
    for (fan_in, fan_out) in dims:
        key, kw, kb = jax.random.split(key, 3)
        bound = 1.0 / (fan_in ** 0.5)
        w = jax.random.uniform(kw, (fan_in, fan_out), jnp.float32,
                               -bound, bound).astype(weight_dtype)
        b = jax.random.uniform(kb, (1, fan_out), jnp.float32, -bound, bound)
        params += [w, b]
    return tuple(params)


def prep_params(params):
    """One-time lane-padding of the edge weights/biases for the kernel.

    w1: zero rows up to 128-lane input width (exact — padded x cols are zero).
    w5/b5: pad output cols to 128 lanes; padded bias = -1e30 (f32) so softmax
    assigns exactly 0 probability to pad columns.
    """
    (w1, b1, w2, b2, w3, b3, w4, b4, w5, b5) = params
    in_dim = w1.shape[0]
    out_dim = w5.shape[1]
    in_pad = _round_up(in_dim, 128)
    out_pad = _round_up(out_dim, 128)

    w1p = jnp.pad(w1, ((0, in_pad - in_dim), (0, 0)))
    w5p = jnp.pad(w5, ((0, 0), (0, out_pad - out_dim)))
    b5p = jnp.pad(b5, ((0, 0), (0, out_pad - out_dim)),
                  constant_values=jnp.float32(-1e30))   # must stay f32
    return (w1p, b1, w2, b2, w3, b3, w4, b4, w5p, b5p)


def reference_forward(x, params):
    """Pure-JAX reference with the same bf16-weights / f32-accumulate numerics."""
    (w1, b1, w2, b2, w3, b3, w4, b4, w5, b5) = params

    def lin(h, w, b):
        return jnp.dot(h.astype(w.dtype), w,
                       preferred_element_type=jnp.float32) + b

    h = jax.nn.relu(lin(x, w1, b1))
    h = jax.nn.relu(lin(h, w2, b2))
    h = jax.nn.relu(lin(h, w3, b3))
    h = jax.nn.relu(lin(h, w4, b4))
    return jax.nn.softmax(lin(h, w5, b5), axis=1)


# ----------------------------------------------------------------------------- demo

if __name__ == "__main__":
    key = jax.random.PRNGKey(0)
    key, kx = jax.random.split(key)
    x = jax.random.normal(kx, (BATCH, IN_DIM), jnp.float32)

    raw_params = init_params(key)
    params = prep_params(raw_params)       # one-time padding, outside the forward

    num_tiles = _num_tensorcores()
    out = jax.block_until_ready(
        chat_model_forward(x, params, out_dim=OUT_DIM, num_tiles=num_tiles))
    ref = reference_forward(x, raw_params)

    assert out.shape == (BATCH, OUT_DIM)
    assert bool(jnp.allclose(out, ref, atol=1e-3, rtol=1e-3)), \
        f"max abs err = {float(jnp.max(jnp.abs(out - ref)))}"
    # softmax rows sum to 1
    assert bool(jnp.allclose(jnp.sum(out, axis=1), jnp.ones((BATCH,)), atol=1e-3))

    print("KERNEL_OK")
</pallas_src>

<mosaic_0001>
module attributes {stable_mosaic.version = 11 : i64} {
  func.func @chat_model_kernel(%arg0: i32, %arg1: memref<16x128xf32, #tpu.memory_space<vmem>>, %arg2: memref<128x128xbf16, #tpu.memory_space<vmem>>, %arg3: memref<1x128xf32, #tpu.memory_space<vmem>>, %arg4: memref<128x128xbf16, #tpu.memory_space<vmem>>, %arg5: memref<1x128xf32, #tpu.memory_space<vmem>>, %arg6: memref<128x128xbf16, #tpu.memory_space<vmem>>, %arg7: memref<1x128xf32, #tpu.memory_space<vmem>>, %arg8: memref<128x128xbf16, #tpu.memory_space<vmem>>, %arg9: memref<1x128xf32, #tpu.memory_space<vmem>>, %arg10: memref<128x128xbf16, #tpu.memory_space<vmem>>, %arg11: memref<1x128xf32, #tpu.memory_space<vmem>>, %arg12: memref<16x128xf32, #tpu.memory_space<vmem>>) attributes {dimension_semantics = [#tpu.dimension_semantics<parallel>], iteration_bounds = array<i64: 1>, scalar_prefetch = 0 : i64, scratch_operands = 0 : i64, tpu.core_type = #tpu.core_type<tc>, window_params = [{transform_indices = @transform_0, window_bounds = array<i64: 16, 128>}, {pipeline_mode = #tpu.pipeline_mode<synchronous>, transform_indices = @transform_1, window_bounds = array<i64: 128, 128>}, {pipeline_mode = #tpu.pipeline_mode<synchronous>, transform_indices = @transform_2, window_bounds = array<i64: 1, 128>}, {pipeline_mode = #tpu.pipeline_mode<synchronous>, transform_indices = @transform_3, window_bounds = array<i64: 128, 128>}, {pipeline_mode = #tpu.pipeline_mode<synchronous>, transform_indices = @transform_4, window_bounds = array<i64: 1, 128>}, {pipeline_mode = #tpu.pipeline_mode<synchronous>, transform_indices = @transform_5, window_bounds = array<i64: 128, 128>}, {pipeline_mode = #tpu.pipeline_mode<synchronous>, transform_indices = @transform_6, window_bounds = array<i64: 1, 128>}, {pipeline_mode = #tpu.pipeline_mode<synchronous>, transform_indices = @transform_7, window_bounds = array<i64: 128, 128>}, {pipeline_mode = #tpu.pipeline_mode<synchronous>, transform_indices = @transform_8, window_bounds = array<i64: 1, 128>}, {pipeline_mode = #tpu.pipeline_mode<synchronous>, transform_indices = @transform_9, window_bounds = array<i64: 128, 128>}, {pipeline_mode = #tpu.pipeline_mode<synchronous>, transform_indices = @transform_10, window_bounds = array<i64: 1, 128>}, {transform_indices = @transform_11, window_bounds = array<i64: 16, 128>}]} {
    %c0 = arith.constant 0 : index
    %c0_0 = arith.constant 0 : index
    %0 = vector.load %arg1[%c0, %c0_0] : memref<16x128xf32, #tpu.memory_space<vmem>>, vector<16x128xf32>
    %1 = arith.truncf %0 : vector<16x128xf32> to vector<16x128xbf16>
    %c0_1 = arith.constant 0 : index
    %c0_2 = arith.constant 0 : index
    %2 = vector.load %arg2[%c0_1, %c0_2] : memref<128x128xbf16, #tpu.memory_space<vmem>>, vector<128x128xbf16>
    %cst = arith.constant dense<0.000000e+00> : vector<16x128xf32>
    %3 = tpu.matmul %1, %2, %cst {dimension_numbers = #tpu.dot_dimension_numbers<[1], [0], [0], [1], [0, 0, 1, 1], [], []>} : vector<16x128xbf16>, vector<128x128xbf16>, vector<16x128xf32> -> vector<16x128xf32>
    %c0_3 = arith.constant 0 : index
    %c0_4 = arith.constant 0 : index
    %4 = vector.load %arg3[%c0_3, %c0_4] : memref<1x128xf32, #tpu.memory_space<vmem>>, vector<1x128xf32>
    %5 = vector.broadcast %4 : vector<1x128xf32> to vector<16x128xf32>
    %6 = arith.addf %3, %5 : vector<16x128xf32>
    %cst_5 = arith.constant 0.000000e+00 : f32
    %7 = vector.broadcast %cst_5 : f32 to vector<16x128xf32>
    %8 = arith.maximumf %6, %7 : vector<16x128xf32>
    %9 = arith.truncf %8 : vector<16x128xf32> to vector<16x128xbf16>
    %c0_6 = arith.constant 0 : index
    %c0_7 = arith.constant 0 : index
    %10 = vector.load %arg4[%c0_6, %c0_7] : memref<128x128xbf16, #tpu.memory_space<vmem>>, vector<128x128xbf16>
    %cst_8 = arith.constant dense<0.000000e+00> : vector<16x128xf32>
    %11 = tpu.matmul %9, %10, %cst_8 {dimension_numbers = #tpu.dot_dimension_numbers<[1], [0], [0], [1], [0, 0, 1, 1], [], []>} : vector<16x128xbf16>, vector<128x128xbf16>, vector<16x128xf32> -> vector<16x128xf32>
    %c0_9 = arith.constant 0 : index
    %c0_10 = arith.constant 0 : index
    %12 = vector.load %arg5[%c0_9, %c0_10] : memref<1x128xf32, #tpu.memory_space<vmem>>, vector<1x128xf32>
    %13 = vector.broadcast %12 : vector<1x128xf32> to vector<16x128xf32>
    %14 = arith.addf %11, %13 : vector<16x128xf32>
    %cst_11 = arith.constant 0.000000e+00 : f32
    %15 = vector.broadcast %cst_11 : f32 to vector<16x128xf32>
    %16 = arith.maximumf %14, %15 : vector<16x128xf32>
    %17 = arith.truncf %16 : vector<16x128xf32> to vector<16x128xbf16>
    %c0_12 = arith.constant 0 : index
    %c0_13 = arith.constant 0 : index
    %18 = vector.load %arg6[%c0_12, %c0_13] : memref<128x128xbf16, #tpu.memory_space<vmem>>, vector<128x128xbf16>
    %cst_14 = arith.constant dense<0.000000e+00> : vector<16x128xf32>
    %19 = tpu.matmul %17, %18, %cst_14 {dimension_numbers = #tpu.dot_dimension_numbers<[1], [0], [0], [1], [0, 0, 1, 1], [], []>} : vector<16x128xbf16>, vector<128x128xbf16>, vector<16x128xf32> -> vector<16x128xf32>
    %c0_15 = arith.constant 0 : index
    %c0_16 = arith.constant 0 : index
    %20 = vector.load %arg7[%c0_15, %c0_16] : memref<1x128xf32, #tpu.memory_space<vmem>>, vector<1x128xf32>
    %21 = vector.broadcast %20 : vector<1x128xf32> to vector<16x128xf32>
    %22 = arith.addf %19, %21 : vector<16x128xf32>
    %cst_17 = arith.constant 0.000000e+00 : f32
    %23 = vector.broadcast %cst_17 : f32 to vector<16x128xf32>
    %24 = arith.maximumf %22, %23 : vector<16x128xf32>
    %25 = arith.truncf %24 : vector<16x128xf32> to vector<16x128xbf16>
    %c0_18 = arith.constant 0 : index
    %c0_19 = arith.constant 0 : index
    %26 = vector.load %arg8[%c0_18, %c0_19] : memref<128x128xbf16, #tpu.memory_space<vmem>>, vector<128x128xbf16>
    %cst_20 = arith.constant dense<0.000000e+00> : vector<16x128xf32>
    %27 = tpu.matmul %25, %26, %cst_20 {dimension_numbers = #tpu.dot_dimension_numbers<[1], [0], [0], [1], [0, 0, 1, 1], [], []>} : vector<16x128xbf16>, vector<128x128xbf16>, vector<16x128xf32> -> vector<16x128xf32>
    %c0_21 = arith.constant 0 : index
    %c0_22 = arith.constant 0 : index
    %28 = vector.load %arg9[%c0_21, %c0_22] : memref<1x128xf32, #tpu.memory_space<vmem>>, vector<1x128xf32>
    %29 = vector.broadcast %28 : vector<1x128xf32> to vector<16x128xf32>
    %30 = arith.addf %27, %29 : vector<16x128xf32>
    %cst_23 = arith.constant 0.000000e+00 : f32
    %31 = vector.broadcast %cst_23 : f32 to vector<16x128xf32>
    %32 = arith.maximumf %30, %31 : vector<16x128xf32>
    %33 = arith.truncf %32 : vector<16x128xf32> to vector<16x128xbf16>
    %c0_24 = arith.constant 0 : index
    %c0_25 = arith.constant 0 : index
    %34 = vector.load %arg10[%c0_24, %c0_25] : memref<128x128xbf16, #tpu.memory_space<vmem>>, vector<128x128xbf16>
    %cst_26 = arith.constant dense<0.000000e+00> : vector<16x128xf32>
    %35 = tpu.matmul %33, %34, %cst_26 {dimension_numbers = #tpu.dot_dimension_numbers<[1], [0], [0], [1], [0, 0, 1, 1], [], []>} : vector<16x128xbf16>, vector<128x128xbf16>, vector<16x128xf32> -> vector<16x128xf32>
    %c0_27 = arith.constant 0 : index
    %c0_28 = arith.constant 0 : index
    %36 = vector.load %arg11[%c0_27, %c0_28] : memref<1x128xf32, #tpu.memory_space<vmem>>, vector<1x128xf32>
    %37 = vector.broadcast %36 : vector<1x128xf32> to vector<16x128xf32>
    %38 = arith.addf %35, %37 : vector<16x128xf32>
    %cst_29 = arith.constant dense<0xFF800000> : vector<16xf32>
    %39 = vector.multi_reduction <maximumf>, %38, %cst_29 [1] : vector<16x128xf32> to vector<16xf32>
    %40 = vector.shape_cast %39 : vector<16xf32> to vector<16x1xf32>
    %41 = vector.broadcast %40 : vector<16x1xf32> to vector<16x128xf32>
    %42 = arith.subf %38, %41 : vector<16x128xf32>
    %43 = math.exp %42 : vector<16x128xf32>
    %cst_30 = arith.constant dense<0.000000e+00> : vector<16xf32>
    %44 = vector.multi_reduction <add>, %43, %cst_30 [1] : vector<16x128xf32> to vector<16xf32>
    %45 = vector.shape_cast %44 : vector<16xf32> to vector<16x1xf32>
    %46 = tpu.reciprocal %45 {approx = true} : vector<16x1xf32> -> vector<16x1xf32>
    %47 = arith.mulf %45, %46 : vector<16x1xf32>
    %cst_31 = arith.constant 2.000000e+00 : f32
    %48 = vector.broadcast %cst_31 : f32 to vector<16x1xf32>
    %49 = arith.subf %48, %47 : vector<16x1xf32>
    %50 = arith.mulf %46, %49 : vector<16x1xf32>
    %51 = vector.broadcast %50 : vector<16x1xf32> to vector<16x128xf32>
    %52 = arith.mulf %43, %51 : vector<16x128xf32>
    %c0_32 = arith.constant 0 : index
    %c0_33 = arith.constant 0 : index
    %53 = vector.load %arg12[%c0_32, %c0_33] : memref<16x128xf32, #tpu.memory_space<vmem>>, vector<16x128xf32>
    tpu.vector_store %arg12[%c0_32, %c0_33], %52 {strides = array<i32>} : memref<16x128xf32, #tpu.memory_space<vmem>>, vector<16x128xf32>,
    return
  }
  func.func @transform_0(%arg0: i32) -> (i32, i32) {
    %c0_i32 = arith.constant 0 : i32
    %c0_i32_0 = arith.constant 0 : i32
    return %arg0, %c0_i32 : i32, i32
  }
  func.func @transform_1(%arg0: i32) -> (i32, i32) {
    %c0_i32 = arith.constant 0 : i32
    %c0_i32_0 = arith.constant 0 : i32
    %c0_i32_1 = arith.constant 0 : i32
    return %c0_i32, %c0_i32_0 : i32, i32
  }
  func.func @transform_2(%arg0: i32) -> (i32, i32) {
    %c0_i32 = arith.constant 0 : i32
    %c0_i32_0 = arith.constant 0 : i32
    %c0_i32_1 = arith.constant 0 : i32
    return %c0_i32, %c0_i32_0 : i32, i32
  }
  func.func @transform_3(%arg0: i32) -> (i32, i32) {
    %c0_i32 = arith.constant 0 : i32
    %c0_i32_0 = arith.constant 0 : i32
    %c0_i32_1 = arith.constant 0 : i32
    return %c0_i32, %c0_i32_0 : i32, i32
  }
  func.func @transform_4(%arg0: i32) -> (i32, i32) {
    %c0_i32 = arith.constant 0 : i32
    %c0_i32_0 = arith.constant 0 : i32
    %c0_i32_1 = arith.constant 0 : i32
    return %c0_i32, %c0_i32_0 : i32, i32
  }
  func.func @transform_5(%arg0: i32) -> (i32, i32) {
    %c0_i32 = arith.constant 0 : i32
    %c0_i32_0 = arith.constant 0 : i32
    %c0_i32_1 = arith.constant 0 : i32
    return %c0_i32, %c0_i32_0 : i32, i32
  }
  func.func @transform_6(%arg0: i32) -> (i32, i32) {
    %c0_i32 = arith.constant 0 : i32
    %c0_i32_0 = arith.constant 0 : i32
    %c0_i32_1 = arith.constant 0 : i32
    return %c0_i32, %c0_i32_0 : i32, i32
  }
  func.func @transform_7(%arg0: i32) -> (i32, i32) {
    %c0_i32 = arith.constant 0 : i32
    %c0_i32_0 = arith.constant 0 : i32
    %c0_i32_1 = arith.constant 0 : i32
    return %c0_i32, %c0_i32_0 : i32, i32
  }
  func.func @transform_8(%arg0: i32) -> (i32, i32) {
    %c0_i32 = arith.constant 0 : i32
    %c0_i32_0 = arith.constant 0 : i32
    %c0_i32_1 = arith.constant 0 : i32
    return %c0_i32, %c0_i32_0 : i32, i32
  }
  func.func @transform_9(%arg0: i32) -> (i32, i32) {
    %c0_i32 = arith.constant 0 : i32
    %c0_i32_0 = arith.constant 0 : i32
    %c0_i32_1 = arith.constant 0 : i32
    return %c0_i32, %c0_i32_0 : i32, i32
  }
  func.func @transform_10(%arg0: i32) -> (i32, i32) {
    %c0_i32 = arith.constant 0 : i32
    %c0_i32_0 = arith.constant 0 : i32
    %c0_i32_1 = arith.constant 0 : i32
    return %c0_i32, %c0_i32_0 : i32, i32
  }
  func.func @transform_11(%arg0: i32) -> (i32, i32) {
    %c0_i32 = arith.constant 0 : i32
    %c0_i32_0 = arith.constant 0 : i32
    return %arg0, %c0_i32 : i32, i32
  }
}

</mosaic_0001>

<bundles_post_ra>
// kernel: chat_model_forward.1
= control target key start
LH: loop header
LB: loop body
LE: loop exit
PB: predicated region body
PF: predicated region fallthrough
CT: control target
= control target key end

     0   :  { %16 = vsyncpa [#allocation3], 0  ;;  %s1378_s0 = inlined_call_operand.vmem [shape: f32[16,128], index: 0, kind: input, shape index: {}]   ;;  %s1379_s1 = inlined_call_operand.hbm [shape: bf16[128,128], index: 1, kind: input, shape index: {}]   ;;  %s1380_s2 = inlined_call_operand.vmem [shape: f32[1,128], index: 2, kind: input, shape index: {}]   ;;  %s1381_s3 = inlined_call_operand.hbm [shape: bf16[128,128], index: 3, kind: input, shape index: {}]   ;;  %s1382_s4 = inlined_call_operand.vmem [shape: f32[1,128], index: 4, kind: input, shape index: {}]   ;;  %s1383_s5 = inlined_call_operand.hbm [shape: bf16[128,128], index: 5, kind: input, shape index: {}]   ;;  %s1384_s6 = inlined_call_operand.vmem [shape: f32[1,128], index: 6, kind: input, shape index: {}]   ;;  %s1385_s7 = inlined_call_operand.hbm [shape: bf16[128,128], index: 7, kind: input, shape index: {}]   ;;  %s1386_s8 = inlined_call_operand.hbm [shape: f32[1,128], index: 8, kind: input, shape index: {}]   ;;  %s1387_s9 = inlined_call_operand.vmem [shape: bf16[128,128], index: 9, kind: input, shape index: {}]   ;;  %s1388_s10 = inlined_call_operand.vmem [shape: f32[1,128], index: 10, kind: input, shape index: {}]   ;;  %s1389_s11 = inlined_call_operand.hbm [shape: f32[16,128], index: 11, kind: output, shape index: {}]  }
   0x1   :  { %17 = vsyncpa [#allocation6], 0 }
   0x2   :  { %18 = vsyncpa [#allocation9], 0 }
   0x3   :  { %19 = vsyncpa [#allocation4], 0  ;;  %s1116_s17 = smov [#allocation5]   ;;  %s1117_s19 = smov [#allocation8]  }
   0x4   :  { %s41_s18 = sshll.u32 %s1116_s17, 4  ;;  %s69_s20 = sshll.u32 %s1117_s19, 4  ;;  %s42_s18 = int_to_ptr.vmem [resolvable:$true] %s41_s18  ;;  %s1188_s20 = int_to_ptr.vmem [resolvable:$true] %s69_s20 }
   0x5   :  { %s976_s23 = scalar_lea.hbm %s1381_s3, 1024 }
   0x6   :  { %p977_p0 = scmp.ne.s32.totalorder %s1381_s3, %s976_s23  ;;  %p980_p1 = scmp.lt.u32.totalorder %s976_s23, %s1381_s3 }
   0x8   :  { %p982_p2 = pnand %p980_p1, %p977_p0 }
   0xa   :  { %985 = shalt.err (!%p982_p2)
}
   0xb   :  { %s986_s28 = scalar_lea.vmem %s42_s18, 1024  ;;  %p991_p4 = scmp.lt.s32.totalorder %s42_s18, %s42_s18 }
   0xc   :  { %p987_p3 = scmp.ne.s32.totalorder %s42_s18, %s986_s28  ;;  %p992_p5 = scmp.lt.s32.totalorder %s986_s28, %s986_s28 }
   0xe   :  { %p993_p6 = por %p992_p5, %p991_p4 }
  0x10   :  { %p994_p7 = pnand %p993_p6, %p987_p3 }
  0x12   :  { %997 = shalt.err (!%p994_p7)
}
  0x13   :  { %s1118_s29 = smov 64   ;;  %s1119_s30 = smov 4  }
  0x14   :  { %47 = dma.hbm_to_vmem [thread:$0]  %s1381_s3, 1024, %s42_s18, [#allocation6], %s1118_s29, %s1118_s29, %s1119_s30  }
  0x15   :  { %s998_s16 = scalar_lea.hbm %s1385_s7, 1024 }
  0x16   :  { %p999_p8 = scmp.ne.s32.totalorder %s1385_s7, %s998_s16  ;;  %p1002_p9 = scmp.lt.u32.totalorder %s998_s16, %s1385_s7 }
  0x18   :  { %p1004_p10 = pnand %p1002_p9, %p999_p8 }
  0x1a   :  { %1007 = shalt.err (!%p1004_p10)
}
  0x1b   :  { %s1008_s23 = scalar_lea.vmem %s1188_s20, 1024  ;;  %p1013_p12 = scmp.lt.s32.totalorder %s1188_s20, %s1188_s20 }
  0x1c   :  { %p1009_p11 = scmp.ne.s32.totalorder %s1188_s20, %s1008_s23  ;;  %p1014_p13 = scmp.lt.s32.totalorder %s1008_s23, %s1008_s23 }
  0x1e   :  { %p1015_p0 = por %p1014_p13, %p1013_p12 }
  0x20   :  { %p1016_p1 = pnand %p1015_p0, %p1009_p11 }
  0x22   :  { %1019 = shalt.err (!%p1016_p1)
}
  0x23   :  { %75 = dma.hbm_to_vmem [thread:$0]  %s1385_s7, 1024, %s1188_s20, [#allocation9], %s1118_s29, %s1118_s29, %s1119_s30  }
  0x24   :  { %s1120_s24 = smov [#allocation2]   ;;  %s1121_s26 = smov [#allocation7]  }
  0x25   :  { %s27_s25 = sshll.u32 %s1120_s24, 4  ;;  %s55_s27 = sshll.u32 %s1121_s26, 4  ;;  %s28_s25 = int_to_ptr.vmem [resolvable:$true] %s27_s25  ;;  %s1225_s27 = int_to_ptr.vmem [resolvable:$true] %s55_s27 }
  0x26   :  { %s1020_s13 = scalar_lea.hbm %s1379_s1, 1024 }
  0x27   :  { %p1021_p2 = scmp.ne.s32.totalorder %s1379_s1, %s1020_s13  ;;  %p1024_p3 = scmp.lt.u32.totalorder %s1020_s13, %s1379_s1 }
  0x29   :  { %p1026_p4 = pnand %p1024_p3, %p1021_p2 }
  0x2b   :  { %1029 = shalt.err (!%p1026_p4)
}
  0x2c   :  { %s1030_s7 = scalar_lea.vmem %s28_s25, 1024  ;;  %p1035_p6 = scmp.lt.s32.totalorder %s28_s25, %s28_s25 }
  0x2d   :  { %p1031_p5 = scmp.ne.s32.totalorder %s28_s25, %s1030_s7  ;;  %p1036_p7 = scmp.lt.s32.totalorder %s1030_s7, %s1030_s7 }
  0x2f   :  { %p1037_p8 = por %p1036_p7, %p1035_p6 }
  0x31   :  { %p1038_p9 = pnand %p1037_p8, %p1031_p5 }
  0x33   :  { %1041 = shalt.err (!%p1038_p9)
}
  0x34   :  { %33 = dma.hbm_to_vmem [thread:$0]  %s1379_s1, 1024, %s28_s25, [#allocation3], %s1118_s29, %s1118_s29, %s1119_s30  }
  0x35   :  { %s1042_s23 = scalar_lea.hbm %s1383_s5, 1024 }
  0x36   :  { %p1043_p10 = scmp.ne.s32.totalorder %s1383_s5, %s1042_s23  ;;  %p1046_p11 = scmp.lt.u32.totalorder %s1042_s23, %s1383_s5 }
  0x38   :  { %p1048_p12 = pnand %p1046_p11, %p1043_p10 }
  0x3a   :  { %1051 = shalt.err (!%p1048_p12)
}
  0x3b   :  { %s1052_s28 = scalar_lea.vmem %s1225_s27, 1024  ;;  %p1057_p0 = scmp.lt.s32.totalorder %s1225_s27, %s1225_s27 }
  0x3c   :  { %p1053_p13 = scmp.ne.s32.totalorder %s1225_s27, %s1052_s28  ;;  %p1058_p1 = scmp.lt.s32.totalorder %s1052_s28, %s1052_s28 }
  0x3e   :  { %p1059_p2 = por %p1058_p1, %p1057_p0 }
  0x40   :  { %p1060_p3 = pnand %p1059_p2, %p1053_p13 }
  0x42   :  { %1063 = shalt.err (!%p1060_p3)
}
  0x43   :  { %61 = dma.hbm_to_vmem [thread:$0]  %s1383_s5, 1024, %s1225_s27, [#allocation6], %s1118_s29, %s1118_s29, %s1119_s30  }
  0x44   :  { %s1122_s12 = smov [#allocation10]   ;;  %s1064_s16 = scalar_lea.hbm %s1386_s8, 16 }
  0x45   :  { %s82_s13 = sshll.u32 %s1122_s12, 4  ;;  %p1065_p4 = scmp.ne.s32.totalorder %s1386_s8, %s1064_s16  ;;  %s83_s13 = int_to_ptr.vmem [resolvable:$true] %s82_s13 }
  0x46   :  { %p1068_p5 = scmp.lt.u32.totalorder %s1064_s16, %s1386_s8 }
  0x48   :  { %p1070_p6 = pnand %p1068_p5, %p1065_p4 }
  0x4a   :  { %1073 = shalt.err (!%p1070_p6)
}
  0x4b   :  { %s1074_s21 = scalar_lea.vmem %s83_s13, 16  ;;  %s1078_s5 = scalar_lea.vmem %s83_s13, 32 }
  0x4c   :  { %p1075_p7 = scmp.ne.s32.totalorder %s83_s13, %s1074_s21  ;;  %p1079_p8 = scmp.lt.s32.totalorder %s83_s13, %s83_s13 }
  0x4d   :  { %p1080_p9 = scmp.lt.s32.totalorder %s1078_s5, %s1074_s21 }
  0x4f   :  { %p1081_p10 = por %p1080_p9, %p1079_p8 }
  0x51   :  { %p1082_p11 = pnand %p1081_p10, %p1075_p7 }
  0x53   :  { %1085 = shalt.err (!%p1082_p11)
}
  0x54   :  { %85 = dma.hbm_to_vmem [thread:$0]  %s1386_s8, 16, %s83_s13, [#allocation9]  }
  0x55   :  { %1108 = dma.done.wait [#allocation3], 1024  }
  0x56   :  { %1109 = vsyncadd [#allocation3], 4294966272 }
  0x57   :  { %1110 = dma.done.wait [#allocation6], 2048  }
  0x58   :  { %1111 = vsyncadd [#allocation6], 4294965248 }
  0x59   :  { %1112 = dma.done.wait [#allocation9], 1040  }
  0x5a   :  { %1113 = vsyncadd [#allocation9], 4294966256  ;;  %v1123_v0 = vmov 0.0   ;;  %vm1124_vm0 = vmmov 0   ;;  %v928_v1 = vld [vmem:[#allocation2] sm:$0xff]   ;;  %v929_v2 = vld [vmem:[#allocation2 + $0x8] sm:$0xff]  }
  0x5b   :  { %816 = vmatprep.subr.bf16.mxu0 %v1123_v0  ;;  %832 = vmatprep.mubr.msk.bf16.mxu0 %vm1124_vm0, %v1123_v0  ;;  %v930_v3 = vld [vmem:[#allocation2 + $0x10] sm:$0xff]   ;;  %v936_v4 = vld [vmem:[#allocation5] sm:$0xff]   ;;  %v931_v5 = vld [vmem:[#allocation2 + $0x18] sm:$0xff]  }
  0x5c   :  { %836 = vmatprep.subr.bf16.mxu1 %v1123_v0  ;;  %852 = vmatprep.mubr.msk.bf16.mxu1 %vm1124_vm0, %v1123_v0  ;;  %v937_v6 = vld [vmem:[#allocation5 + $0x8] sm:$0xff]   ;;  %v932_v7 = vld [vmem:[#allocation2 + $0x20] sm:$0xff]   ;;  %v938_v8 = vld [vmem:[#allocation5 + $0x10] sm:$0xff]  }
  0x5d   :  { %817 = vmatpush3.bf16.msra.mxu0 %v928_v1  ;;  %837 = vmatpush3.bf16.msra.mxu1 %v936_v4  ;;  %v933_v9 = vld [vmem:[#allocation2 + $0x28] sm:$0xff]   ;;  %v939_v10 = vld [vmem:[#allocation5 + $0x18] sm:$0xff]   ;;  %v934_v11 = vld [vmem:[#allocation2 + $0x30] sm:$0xff]  }
  0x5e   :  { %818 = vmatprep.subr.bf16.mxu0 %v1123_v0  ;;  %838 = vmatprep.subr.bf16.mxu1 %v1123_v0  ;;  %v940_v12 = vld [vmem:[#allocation5 + $0x20] sm:$0xff]   ;;  %v935_v13 = vld [vmem:[#allocation2 + $0x38] sm:$0xff]   ;;  %v106_v14 = vld [vmem:[%s1378_s0] sm:$0xff] }
  0x5f   :  { %v107_v15 = vld [vmem:[%s1378_s0 + $0x8] sm:$0xff]  ;;  %v941_v16 = vld [vmem:[#allocation5 + $0x28] sm:$0xff]   ;;  %v942_v18 = vld [vmem:[#allocation5 + $0x30] sm:$0xff]  }
  0x60   :  { %v108_v17 = vpack.c.bf16 %v107_v15, %v106_v14  ;;  %v943_v19 = vld [vmem:[#allocation5 + $0x38] sm:$0xff]   ;;  %v944_v20 = vld [vmem:[#allocation7] sm:$0xff]   ;;  %v945_v21 = vld [vmem:[#allocation7 + $0x8] sm:$0xff]  }
  0x61   :  { %819 = vmatpush3.bf16.msra.mxu0 %v929_v2  ;;  %839 = vmatpush3.bf16.msra.mxu1 %v937_v6  ;;  %v946_v22 = vld [vmem:[#allocation7 + $0x10] sm:$0xff]   ;;  %v947_v23 = vld [vmem:[#allocation7 + $0x18] sm:$0xff]   ;;  %v948_v24 = vld [vmem:[#allocation7 + $0x20] sm:$0xff]  }
  0x62   :  { %820 = vmatprep.subr.bf16.mxu0 %v1123_v0  ;;  %840 = vmatprep.subr.bf16.mxu1 %v1123_v0  ;;  %v949_v25 = vld [vmem:[#allocation7 + $0x28] sm:$0xff]   ;;  %v726_v26 = vld [vmem:[%s1380_s2] ss:$0 sm:$0xff]  ;;  %v951_v37 = vld [vmem:[#allocation7 + $0x38] sm:$0xff]  }
  0x63   :  { %v950_v36 = vld [vmem:[#allocation7 + $0x30] sm:$0xff]   ;;  %v952_v38 = vld [vmem:[#allocation8] sm:$0xff]   ;;  %v953_v39 = vld [vmem:[#allocation8 + $0x8] sm:$0xff]  }
  0x64   :  { %v954_v40 = vld [vmem:[#allocation8 + $0x10] sm:$0xff]   ;;  %v955_v41 = vld [vmem:[#allocation8 + $0x18] sm:$0xff]   ;;  %v956_v42 = vld [vmem:[#allocation8 + $0x20] sm:$0xff]  }
  0x65   :  { %821 = vmatpush3.bf16.msra.mxu0 %v930_v3  ;;  %841 = vmatpush3.bf16.msra.mxu1 %v938_v8  ;;  %v957_v43 = vld [vmem:[#allocation8 + $0x28] sm:$0xff]   ;;  %v735_v44 = vld [vmem:[%s1382_s4] ss:$0 sm:$0xff]  ;;  %v959_v55 = vld [vmem:[#allocation8 + $0x38] sm:$0xff]  }
  0x66   :  { %822 = vmatprep.subr.bf16.mxu0 %v1123_v0  ;;  %842 = vmatprep.subr.bf16.mxu1 %v1123_v0  ;;  %v958_v54 = vld [vmem:[#allocation8 + $0x30] sm:$0xff]   ;;  %v961_v57 = vld [vmem:[%s1387_s9 + $0x8] sm:$0xff]   ;;  %v962_v58 = vld [vmem:[%s1387_s9 + $0x10] sm:$0xff]  }
  0x67   :  { %v960_v56 = vld [vmem:[%s1387_s9] sm:$0xff]   ;;  %v963_v59 = vld [vmem:[%s1387_s9 + $0x18] sm:$0xff]   ;;  %v965_v61 = vld [vmem:[%s1387_s9 + $0x28] sm:$0xff]  }
  0x68   :  { %v964_v60 = vld [vmem:[%s1387_s9 + $0x20] sm:$0xff]  }
  0x69   :  { %823 = vmatpush3.bf16.msra.mxu0 %v931_v5  ;;  %843 = vmatpush3.bf16.msra.mxu1 %v939_v10  ;;  %v744_v62 = vld [vmem:[%s1384_s6] ss:$0 sm:$0xff]  ;;  %v967_v10 = vld [vmem:[%s1387_s9 + $0x38] sm:$0xff]  }
  0x6a   :  { %824 = vmatprep.subr.bf16.mxu0 %v1123_v0  ;;  %844 = vmatprep.subr.bf16.mxu1 %v1123_v0 }
  0x6d   :  { %825 = vmatpush3.bf16.msra.mxu0 %v932_v7  ;;  %845 = vmatpush3.bf16.msra.mxu1 %v940_v12 }
  0x6e   :  { %826 = vmatprep.subr.bf16.mxu0 %v1123_v0  ;;  %846 = vmatprep.subr.bf16.mxu1 %v1123_v0 }
  0x71   :  { %827 = vmatpush3.bf16.msra.mxu0 %v933_v9  ;;  %847 = vmatpush3.bf16.msra.mxu1 %v941_v16  ;;  %v966_v9 = vld [vmem:[%s1387_s9 + $0x30] sm:$0xff]   ;;  %s1125_s9 = smov [#allocation11]  }
  0x72   :  { %828 = vmatprep.subr.bf16.mxu0 %v1123_v0  ;;  %848 = vmatprep.subr.bf16.mxu1 %v1123_v0 }
  0x75   :  { %829 = vmatpush3.bf16.msra.mxu0 %v934_v11  ;;  %849 = vmatpush3.bf16.msra.mxu1 %v942_v18  ;;  %v753_v11 = vld [vmem:[#allocation10] ss:$0 sm:$0xff] }
  0x76   :  { %830 = vmatprep.subr.bf16.mxu0 %v1123_v0  ;;  %850 = vmatprep.subr.bf16.mxu1 %v1123_v0 }
  0x79   :  { %831 = vmatpush3.bf16.msra.mxu0 %v935_v13  ;;  %851 = vmatpush3.bf16.msra.mxu1 %v943_v19 }
  0x7a   :  { %856 = vmatprep.subr.bf16.mxu0 %v1123_v0  ;;  %876 = vmatprep.subr.bf16.mxu1 %v1123_v0 }
  0x7c   :  { %833 = vmatmul.mubr.bf16.vlgmr.msra.gmra.mrb[0].mxu0 %v108_v17 }
  0x7d   :  { %872 = vmatprep.mubr.msk.bf16.mxu0 %vm1124_vm0, %v1123_v0  ;;  %857 = vmatpush3.bf16.msra.mxu0 %v944_v20 }
  0x7e   :  { %858 = vmatprep.subr.bf16.mxu0 %v1123_v0 }
  0x81   :  { %859 = vmatpush3.bf16.msra.mxu0 %v945_v21 }
  0x82   :  { %860 = vmatprep.subr.bf16.mxu0 %v1123_v0 }
  0x85   :  { %861 = vmatpush3.bf16.msra.mxu0 %v946_v22 }
  0x86   :  { %862 = vmatprep.subr.bf16.mxu0 %v1123_v0 }
  0x89   :  { %863 = vmatpush3.bf16.msra.mxu0 %v947_v23 }
  0x8a   :  { %864 = vmatprep.subr.bf16.mxu0 %v1123_v0 }
  0x8d   :  { %865 = vmatpush3.bf16.msra.mxu0 %v948_v24 }
  0x8e   :  { %866 = vmatprep.subr.bf16.mxu0 %v1123_v0 }
  0x91   :  { %867 = vmatpush3.bf16.msra.mxu0 %v949_v25 }
  0x92   :  { %868 = vmatprep.subr.bf16.mxu0 %v1123_v0 }
  0x95   :  { %869 = vmatpush3.bf16.msra.mxu0 %v950_v36 }
  0x96   :  { %870 = vmatprep.subr.bf16.mxu0 %v1123_v0 }
  0x99   :  { %871 = vmatpush3.bf16.msra.mxu0 %v951_v37 }
  0x9a   :  { %896 = vmatprep.subr.bf16.mxu0 %v1123_v0 }
 0x14f   :  { %v214_v27 = vpop.f32.mrb[0].mxu0 }
 0x150   :  { %v215_v28 = vadd.f32 %v726_v26, %v214_v27  ;;  %v834_v29 = vpop.f32.mrb[1].mxu0 }
 0x151   :  { %v217_v30 = vpop.f32.mrb[2].mxu0 }
 0x152   :  { %v218_v31 = vadd.f32 %v726_v26, %v217_v30  ;;  %v835_v32 = vpop.f32.mrb[3].mxu0  ;;  %v221_v33 = vmax.f32 %v215_v28, 0.0 }
 0x154   :  { %v222_v34 = vmax.f32 %v218_v31, 0.0 }
 0x156   :  { %v223_v35 = vpack.c.bf16 %v222_v34, %v221_v33 }
 0x158   :  { %853 = vmatmul.mubr.bf16.vlgmr.msra.gmra.mrb[0].mxu1 %v223_v35 }
 0x159   :  { %892 = vmatprep.mubr.msk.bf16.mxu1 %vm1124_vm0, %v1123_v0  ;;  %877 = vmatpush3.bf16.msra.mxu1 %v952_v38 }
 0x15a   :  { %878 = vmatprep.subr.bf16.mxu1 %v1123_v0 }
 0x15d   :  { %879 = vmatpush3.bf16.msra.mxu1 %v953_v39 }
 0x15e   :  { %880 = vmatprep.subr.bf16.mxu1 %v1123_v0 }
 0x161   :  { %881 = vmatpush3.bf16.msra.mxu1 %v954_v40 }
 0x162   :  { %882 = vmatprep.subr.bf16.mxu1 %v1123_v0 }
 0x165   :  { %883 = vmatpush3.bf16.msra.mxu1 %v955_v41 }
 0x166   :  { %884 = vmatprep.subr.bf16.mxu1 %v1123_v0 }
 0x169   :  { %885 = vmatpush3.bf16.msra.mxu1 %v956_v42 }
 0x16a   :  { %886 = vmatprep.subr.bf16.mxu1 %v1123_v0 }
 0x16d   :  { %887 = vmatpush3.bf16.msra.mxu1 %v957_v43 }
 0x16e   :  { %888 = vmatprep.subr.bf16.mxu1 %v1123_v0 }
 0x171   :  { %889 = vmatpush3.bf16.msra.mxu1 %v958_v54 }
 0x172   :  { %890 = vmatprep.subr.bf16.mxu1 %v1123_v0 }
 0x175   :  { %891 = vmatpush3.bf16.msra.mxu1 %v959_v55 }
 0x22b   :  { %v329_v45 = vpop.f32.mrb[0].mxu1 }
 0x22c   :  { %v330_v46 = vadd.f32 %v735_v44, %v329_v45  ;;  %v854_v47 = vpop.f32.mrb[1].mxu1 }
 0x22d   :  { %v332_v48 = vpop.f32.mrb[2].mxu1 }
 0x22e   :  { %v333_v49 = vadd.f32 %v735_v44, %v332_v48  ;;  %v855_v50 = vpop.f32.mrb[3].mxu1  ;;  %v336_v51 = vmax.f32 %v330_v46, 0.0 }
 0x230   :  { %v337_v52 = vmax.f32 %v333_v49, 0.0 }
 0x232   :  { %v338_v53 = vpack.c.bf16 %v337_v52, %v336_v51 }
 0x234   :  { %873 = vmatmul.mubr.bf16.vlgmr.msra.gmra.mrb[4].mxu0 %v338_v53 }
 0x235   :  { %912 = vmatprep.mubr.msk.bf16.mxu0 %vm1124_vm0, %v1123_v0  ;;  %897 = vmatpush3.bf16.msra.mxu0 %v960_v56 }
 0x236   :  { %898 = vmatprep.subr.bf16.mxu0 %v1123_v0 }
 0x239   :  { %899 = vmatpush3.bf16.msra.mxu0 %v961_v57 }
 0x23a   :  { %900 = vmatprep.subr.bf16.mxu0 %v1123_v0 }
 0x23d   :  { %901 = vmatpush3.bf16.msra.mxu0 %v962_v58 }
 0x23e   :  { %902 = vmatprep.subr.bf16.mxu0 %v1123_v0 }
 0x241   :  { %903 = vmatpush3.bf16.msra.mxu0 %v963_v59 }
 0x242   :  { %904 = vmatprep.subr.bf16.mxu0 %v1123_v0 }
 0x245   :  { %905 = vmatpush3.bf16.msra.mxu0 %v964_v60 }
 0x246   :  { %906 = vmatprep.subr.bf16.mxu0 %v1123_v0 }
 0x249   :  { %907 = vmatpush3.bf16.msra.mxu0 %v965_v61 }
 0x24a   :  { %908 = vmatprep.subr.bf16.mxu0 %v1123_v0 }
 0x24d   :  { %909 = vmatpush3.bf16.msra.mxu0 %v966_v9 }
 0x24e   :  { %910 = vmatprep.subr.bf16.mxu0 %v1123_v0  ;;  %v762_v0 = vld [vmem:[%s1388_s10] ss:$0 sm:$0xff]  ;;  %s712_s10 = sshll.u32 %s1125_s9, 4  ;;  %s713_s10 = int_to_ptr.vmem [resolvable:$true] %s712_s10 }
 0x24f   :  { %s1086_s8 = scalar_lea.vmem %s713_s10, 256  ;;  %p1091_p13 = scmp.lt.s32.totalorder %s713_s10, %s713_s10 }
 0x250   :  { %p1087_p12 = scmp.ne.s32.totalorder %s713_s10, %s1086_s8  ;;  %p1092_p0 = scmp.lt.s32.totalorder %s1086_s8, %s1086_s8 }
 0x251   :  { %911 = vmatpush3.bf16.msra.mxu0 %v967_v10 }
 0x252   :  { %p1093_p1 = por %p1092_p0, %p1091_p13 }
 0x254   :  { %p1094_p2 = pnand %p1093_p1, %p1087_p12 }
 0x307   :  { %v444_v63 = vpop.f32.mrb[4].mxu0 }
 0x308   :  { %v445_v1 = vadd.f32 %v744_v62, %v444_v63  ;;  %v874_v2 = vpop.f32.mrb[5].mxu0 }
 0x309   :  { %v447_v3 = vpop.f32.mrb[6].mxu0 }
 0x30a   :  { %v448_v4 = vadd.f32 %v744_v62, %v447_v3  ;;  %v875_v5 = vpop.f32.mrb[7].mxu0  ;;  %v451_v6 = vmax.f32 %v445_v1, 0.0 }
 0x30c   :  { %v452_v7 = vmax.f32 %v448_v4, 0.0 }
 0x30e   :  { %v453_v8 = vpack.c.bf16 %v452_v7, %v451_v6 }
 0x310   :  { %893 = vmatmul.mubr.bf16.vlgmr.msra.gmra.mrb[4].mxu1 %v453_v8 }
 0x3e3   :  { %v559_v12 = vpop.f32.mrb[4].mxu1 }
 0x3e4   :  { %v560_v13 = vadd.f32 %v753_v11, %v559_v12  ;;  %v894_v14 = vpop.f32.mrb[5].mxu1 }
 0x3e5   :  { %v562_v15 = vpop.f32.mrb[6].mxu1 }
 0x3e6   :  { %v563_v16 = vadd.f32 %v753_v11, %v562_v15  ;;  %v895_v17 = vpop.f32.mrb[7].mxu1  ;;  %v566_v18 = vmax.f32 %v560_v13, 0.0 }
 0x3e8   :  { %v567_v19 = vmax.f32 %v563_v16, 0.0 }
 0x3ea   :  { %v568_v20 = vpack.c.bf16 %v567_v19, %v566_v18 }
 0x3ec   :  { %913 = vmatmul.mubr.bf16.vlgmr.msra.gmra.mrb[8].mxu0 %v568_v20 }
 0x4bf   :  { %v674_v21 = vpop.f32.mrb[8].mxu0 }
 0x4c0   :  { %v675_v22 = vadd.f32 %v762_v0, %v674_v21  ;;  %v914_v23 = vpop.f32.mrb[9].mxu0 }
 0x4c1   :  { %v677_v24 = vpop.f32.mrb[10].mxu0 }
 0x4c2   :  { %681 = vmax.xlane.f32.xlu0 %v675_v22  ;;  %v915_v25 = vpop.f32.mrb[11].mxu0  ;;  %v678_v26 = vadd.f32 %v762_v0, %v677_v24 }
 0x4c6   :  { %683 = vmax.xlane.f32.xlu0 %v678_v26 }
 0x54f   :  { %v682_v27 = vpop.xlane.xlu0 %681 }
 0x550   :  { %v685_v28 = vsub.f32 %v675_v22, %v682_v27 }
 0x552   :  { %v687_v29 = vmul.f32 1.442695, %v685_v28 }
 0x553   :  { %v684_v30 = vpop.xlane.xlu0 %683 }
 0x554   :  { %968 = vpow2.f32 %v687_v29  ;;  %v686_v31 = vsub.f32 %v678_v26, %v684_v30 }
 0x556   :  { %v689_v32 = vmul.f32 1.442695, %v686_v31 }
 0x558   :  { %970 = vpow2.f32 %v689_v32 }
 0x55e   :  { %v969_v33 = vpop.eup %968 }
 0x55f   :  { %691 = vadd.xlane.f32.xlu1 %v969_v33 }
 0x562   :  { %v971_v34 = vpop.eup %970 }
 0x563   :  { %693 = vadd.xlane.f32.xlu1 %v971_v34 }
 0x5ec   :  { %v692_v35 = vpop.xlane.xlu1 %691 }
 0x5ed   :  { %972 = vrcp.f32 %v692_v35 }
 0x5f0   :  { %v694_v36 = vpop.xlane.xlu1 %693 }
 0x5f1   :  { %974 = vrcp.f32 %v694_v36 }
 0x5f7   :  { %v973_v37 = vpop.eup %972 }
 0x5f8   :  { %v697_v38 = vmul.f32 %v973_v37, %v692_v35 }
 0x5fa   :  { %v699_v39 = vsub.f32 2.0, %v697_v38 }
 0x5fb   :  { %v975_v40 = vpop.eup %974 }
 0x5fc   :  { %v701_v41 = vmul.f32 %v973_v37, %v699_v39  ;;  %v698_v42 = vmul.f32 %v975_v40, %v694_v36 }
 0x5fe   :  { %v703_v43 = vmul.f32 %v969_v33, %v701_v41  ;;  %v700_v44 = vsub.f32 2.0, %v698_v42 }
 0x600   :  { %705 = vst [vmem:[#allocation11] sm:$0xff] %v703_v43  ;;  %v702_v45 = vmul.f32 %v975_v40, %v700_v44 }
 0x602   :  { %v704_v46 = vmul.f32 %v971_v34, %v702_v45 }
 0x604   :  { %706 = vst [vmem:[#allocation11 + $0x8] sm:$0xff] %v704_v46 }
 0x605   :  { %1097 = shalt.err (!%p1094_p2)
}
 0x606   :  { %s1098_s23 = scalar_lea.hbm %s1389_s11, 256 }
 0x607   :  { %p1099_p3 = scmp.ne.s32.totalorder %s1389_s11, %s1098_s23  ;;  %p1102_p4 = scmp.lt.u32.totalorder %s1098_s23, %s1389_s11 }
 0x609   :  { %p1104_p5 = pnand %p1102_p4, %p1099_p3 }
 0x60b   :  { %1107 = shalt.err (!%p1104_p5)
}
 0x60c   :  { %s1126_s4 = smov 128   ;;  %s1127_s24 = smov 8  }
 0x60d   :  { %718 = dma.vmem_to_hbm [thread:$0]  %s713_s10, 256, %s1389_s11, [#allocation4], %s1126_s4, %s1126_s4, %s1127_s24  }
 0x60e   :  { %1114 = dma.done.wait [#allocation4], 256  }
 0x60f   :  { %1115 = vsyncadd [#allocation4], 4294967040 }
 0x610   :  { %722 = vsyncpa [#allocation3], 1 }
 0x611   :  { %723 = vsyncpa [#allocation6], 1 }
 0x612   :  { %724 = vsyncpa [#allocation9], 1 }
 0x613   :  { %725 = vsyncpa [#allocation4], 1 }

</bundles_post_ra>
